<compile_context>
chip_gen: v5e
topology: v5e:2x2
jax: 0.10.0
libtpu: 0.0.40
codegen_flags: <defaults>
</compile_context>

<pallas_src>
import functools

import jax
import jax.numpy as jnp
from jax.experimental import pallas as pl
from jax.experimental.pallas import tpu as pltpu


def _round_up(v, m):
    return ((v + m - 1) // m) * m


def _conv_bn_relu_kernel(x_ref, w_ref, shift_ref, o_ref, rhs_ref, *,
                         tap_offsets, cin_pad, tc, n_chunks, b_blk):
    """Processes `b_blk` images per grid step, in lane-dense column chunks.

    x_ref:     (b_blk, Cin_pad, L_in)      zero-padded, row-major-flattened NCHW input
    w_ref:     (Cout, T*Cin_pad)           BN-scale-folded, tap-major packed weights
    shift_ref: (Cout, 1)                   BN shift (beta - mean*scale), f32
    o_ref:     (b_blk, Cout, n_chunks*tc)  lane-dense flat output
    rhs_ref:   (T*Cin_pad, tc)             VMEM scratch: im2col RHS for one chunk
    """
    w = w_ref[...]            # hoisted: loaded once per grid step
    shift = shift_ref[...]
    for b in range(b_blk):                         # static unroll
        for s in range(n_chunks):                  # static unroll
            base = s * tc
            # Build the im2col RHS: sublane-aligned static-slice writes (no acc slab).
            for t, off in enumerate(tap_offsets):  # static unroll over taps
                rhs_ref[t * cin_pad:(t + 1) * cin_pad, :] = (
                    x_ref[b, :, base + off: base + off + tc])
            # One MXU contraction with K = KH*KW*Cin_pad; BN shift added to the single
            # result (no zero-init pass, no per-tap read-modify-write of an f32 slab).
            y = jnp.dot(w, rhs_ref[...], preferred_element_type=jnp.float32) + shift
            o_ref[b, :, base:base + tc] = jnp.maximum(y, 0.0).astype(o_ref.dtype)


def basic_conv2d(x, weight, gamma, beta, running_mean, running_var, *,
                 stride=1, padding=0, dilation=1, eps=1e-5,
                 compute_dtype=None, out_dtype=None, col_chunk=512):
    """x: (N, Cin, H, W); weight: (Cout, Cin, KH, KW) as in nn.Conv2d(bias=False)."""
    N, Cin, H, W = x.shape
    Cout, Cin_w, KH, KW = weight.shape
    assert Cin_w == Cin
    s, p, d = stride, padding, dilation

    Hp, Wp = H + 2 * p, W + 2 * p
    H_out = (Hp - d * (KH - 1) - 1) // s + 1
    W_out = (Wp - d * (KW - 1) - 1) // s + 1
    assert H_out > 0 and W_out > 0

    cdt = x.dtype if compute_dtype is None else jnp.dtype(compute_dtype)
    odt = x.dtype if out_dtype is None else jnp.dtype(out_dtype)

    # Sublane tile height for the compute dtype (8 for 32-bit, 16 for bf16): keeps the
    # im2col scratch writes tile-aligned.
    sub = 8 * (4 // jnp.dtype(cdt).itemsize)
    cin_pad = _round_up(Cin, sub)
    T = KH * KW
    ktot = T * cin_pad

    # ---- fold BN (inference) into weights; pack tap-major (Cout, T*Cin_pad) ----
    scale = (gamma / jnp.sqrt(running_var + eps)).astype(jnp.float32)
    shift = (beta.astype(jnp.float32)
             - running_mean.astype(jnp.float32) * scale).reshape(Cout, 1)
    w_scaled = weight.astype(jnp.float32) * scale[:, None, None, None]
    w_packed = jnp.transpose(w_scaled, (0, 2, 3, 1)).reshape(Cout, T, Cin)
    w_packed = jnp.pad(w_packed, ((0, 0), (0, 0), (0, cin_pad - Cin)))
    w_packed = w_packed.reshape(Cout, ktot).astype(cdt)

    # ---- flat geometry (wrapped-conv trick on the row-major padded image) ----
    tap_offsets = tuple(dy * d * Wp + dx * d for dy in range(KH) for dx in range(KW))
    max_off = tap_offsets[-1]
    rows = (H_out - 1) * s + 1                    # padded-grid rows carrying outputs
    tc = _round_up(min(col_chunk, _round_up(rows * Wp, 128)), 128)
    n_chunks = -(-(rows * Wp) // tc)
    out_cols = n_chunks * tc                      # lane-dense kernel output width
    l_need = out_cols + max_off                   # last flat element any tap reads

    # ---- single pad: channel pad + spatial pad + flat slack (extra bottom rows) ----
    extra_rows = -(-(max(0, l_need - Hp * Wp)) // Wp)
    xp = jnp.pad(x, ((0, 0), (0, cin_pad - Cin), (p, p + extra_rows), (p, p)))
    l_in = (Hp + extra_rows) * Wp
    x_flat = xp.reshape(N, cin_pad, l_in).astype(cdt)

    # ---- batch blocking: amortize per-step overhead, keep >=2 steps for megacore ----
    b_blk = max(1, min(N // 2 if N >= 2 else 1, max(1, 2048 // out_cols)))
    while N % b_blk:
        b_blk -= 1
    n_steps = N // b_blk

    # ---- VMEM budget from the actual block footprint (cap 64 MiB: legal on v7x too) ----
    isz_c, isz_o = jnp.dtype(cdt).itemsize, jnp.dtype(odt).itemsize
    vmem_need = (2 * b_blk * cin_pad * l_in * isz_c        # double-buffered input
                 + 2 * Cout * ktot * isz_c                 # weights
                 + 2 * Cout * 4                            # shift
                 + 2 * b_blk * Cout * out_cols * isz_o     # double-buffered output
                 + ktot * tc * isz_c                       # im2col scratch
                 + Cout * tc * 4)                          # dot result
    vmem_limit = int(min(max(2 * vmem_need, 16 * 1024 * 1024), 64 * 1024 * 1024))

    kernel = functools.partial(_conv_bn_relu_kernel,
                               tap_offsets=tap_offsets, cin_pad=cin_pad,
                               tc=tc, n_chunks=n_chunks, b_blk=b_blk)

    out_flat = pl.pallas_call(
        kernel,
        out_shape=jax.ShapeDtypeStruct((N, Cout, out_cols), odt),
        grid_spec=pltpu.PrefetchScalarGridSpec(
            num_scalar_prefetch=0,
            grid=(n_steps,),
            in_specs=[
                pl.BlockSpec((b_blk, cin_pad, l_in), lambda n: (n, 0, 0)),
                pl.BlockSpec((Cout, ktot), lambda n: (0, 0)),
                pl.BlockSpec((Cout, 1), lambda n: (0, 0)),
            ],
            out_specs=pl.BlockSpec((b_blk, Cout, out_cols), lambda n: (n, 0, 0)),
            scratch_shapes=[pltpu.VMEM((ktot, tc), cdt)],
        ),
        compiler_params=pltpu.CompilerParams(
            dimension_semantics=("parallel",),    # batch steps shard across v7x cores
            vmem_limit_bytes=vmem_limit,
        ),
    )(x_flat, w_packed, shift)

    # ---- extract valid pixels: free reshape + cheap slice (no transpose) ----
    y = out_flat[:, :, :rows * Wp].reshape(N, Cout, rows, Wp)
    y = y[:, :, ::s, 0:(W_out - 1) * s + 1:s]     # (N, Cout, H_out, W_out)
    return y


def _reference(x, weight, gamma, beta, running_mean, running_var, *,
               stride, padding, dilation, eps=1e-5):
    y = jax.lax.conv_general_dilated(
        x, weight,
        window_strides=(stride, stride),
        padding=((padding, padding), (padding, padding)),
        rhs_dilation=(dilation, dilation),
        dimension_numbers=("NCHW", "OIHW", "NCHW"))
    scale = gamma / jnp.sqrt(running_var + eps)
    shift = beta - running_mean * scale
    y = y * scale[None, :, None, None] + shift[None, :, None, None]
    return jnp.maximum(y, 0.0)


if __name__ == "__main__":
    key = jax.random.PRNGKey(0)
    k_x, k_w, k_g, k_b, k_m, k_v = jax.random.split(key, 6)

    N, Cin, H, W = 2, 4, 16, 16
    Cout, K, stride, padding, dilation = 8, 3, 1, 1, 1

    x = jax.random.normal(k_x, (N, Cin, H, W), dtype=jnp.float32)
    weight = jax.random.normal(k_w, (Cout, Cin, K, K), dtype=jnp.float32) * 0.1
    gamma = 1.0 + 0.1 * jax.random.normal(k_g, (Cout,), dtype=jnp.float32)
    beta = 0.1 * jax.random.normal(k_b, (Cout,), dtype=jnp.float32)
    running_mean = 0.05 * jax.random.normal(k_m, (Cout,), dtype=jnp.float32)
    running_var = 1.0 + 0.1 * jnp.abs(jax.random.normal(k_v, (Cout,), dtype=jnp.float32))

    ref = _reference(x, weight, gamma, beta, running_mean, running_var,
                     stride=stride, padding=padding, dilation=dilation)

    # f32 operands (tight check)
    out = basic_conv2d(x, weight, gamma, beta, running_mean, running_var,
                       stride=stride, padding=padding, dilation=dilation)
    out = jax.block_until_ready(out)
    assert out.shape == (N, Cout, H, W), out.shape
    assert jnp.allclose(out, ref, atol=2e-4, rtol=2e-4), "f32 mismatch vs reference"

    # bf16 operands (HBM-bandwidth optimization; f32 MXU accumulate, looser tolerance)
    out_bf16 = basic_conv2d(x, weight, gamma, beta, running_mean, running_var,
                            stride=stride, padding=padding, dilation=dilation,
                            compute_dtype=jnp.bfloat16)
    out_bf16 = jax.block_until_ready(out_bf16)
    assert jnp.allclose(out_bf16, ref, atol=5e-2, rtol=5e-2), "bf16 mismatch vs reference"

    print("KERNEL_OK")
</pallas_src>

<mosaic_0001>
module attributes {stable_mosaic.version = 11 : i64} {
  func.func @_conv_bn_relu_kernel(%arg0: i32, %arg1: memref<1x8x432xf32, #tpu.memory_space<vmem>>, %arg2: memref<8x72xf32, #tpu.memory_space<vmem>>, %arg3: memref<8x1xf32, #tpu.memory_space<vmem>>, %arg4: memref<1x8x384xf32, #tpu.memory_space<vmem>>, %arg5: memref<72x384xf32, #tpu.memory_space<vmem>>) attributes {dimension_semantics = [#tpu.dimension_semantics<parallel>], iteration_bounds = array<i64: 2>, scalar_prefetch = 0 : i64, scratch_operands = 1 : i64, tpu.core_type = #tpu.core_type<tc>, window_params = [{transform_indices = @transform_0, window_bounds = array<i64: 1, 8, 432>}, {pipeline_mode = #tpu.pipeline_mode<synchronous>, transform_indices = @transform_1, window_bounds = array<i64: 8, 72>}, {pipeline_mode = #tpu.pipeline_mode<synchronous>, transform_indices = @transform_2, window_bounds = array<i64: 8, 1>}, {transform_indices = @transform_3, window_bounds = array<i64: 1, 8, 384>}]} {
    %c0 = arith.constant 0 : index
    %c0_0 = arith.constant 0 : index
    %0 = vector.load %arg2[%c0, %c0_0] : memref<8x72xf32, #tpu.memory_space<vmem>>, vector<8x72xf32>
    %c0_1 = arith.constant 0 : index
    %c0_2 = arith.constant 0 : index
    %1 = vector.load %arg3[%c0_1, %c0_2] : memref<8x1xf32, #tpu.memory_space<vmem>>, vector<8x1xf32>
    %c0_3 = arith.constant 0 : index
    %c0_4 = arith.constant 0 : index
    %c0_5 = arith.constant 0 : index
    %2 = vector.load %arg1[%c0_3, %c0_4, %c0_5] : memref<1x8x432xf32, #tpu.memory_space<vmem>>, vector<1x8x384xf32>
    %3 = vector.shape_cast %2 : vector<1x8x384xf32> to vector<8x384xf32>
    %c0_6 = arith.constant 0 : index
    %c0_7 = arith.constant 0 : index
    %4 = vector.load %arg5[%c0_6, %c0_7] : memref<72x384xf32, #tpu.memory_space<vmem>>, vector<8x384xf32>
    tpu.vector_store %arg5[%c0_6, %c0_7], %3 {strides = array<i32>} : memref<72x384xf32, #tpu.memory_space<vmem>>, vector<8x384xf32>,
    %c0_8 = arith.constant 0 : index
    %c0_9 = arith.constant 0 : index
    %c1 = arith.constant 1 : index
    %5 = vector.load %arg1[%c0_8, %c0_9, %c1] : memref<1x8x432xf32, #tpu.memory_space<vmem>>, vector<1x8x384xf32>
    %6 = vector.shape_cast %5 : vector<1x8x384xf32> to vector<8x384xf32>
    %c8 = arith.constant 8 : index
    %c0_10 = arith.constant 0 : index
    %7 = vector.load %arg5[%c8, %c0_10] : memref<72x384xf32, #tpu.memory_space<vmem>>, vector<8x384xf32>
    tpu.vector_store %arg5[%c8, %c0_10], %6 {strides = array<i32>} : memref<72x384xf32, #tpu.memory_space<vmem>>, vector<8x384xf32>,
    %c0_11 = arith.constant 0 : index
    %c0_12 = arith.constant 0 : index
    %c2 = arith.constant 2 : index
    %8 = vector.load %arg1[%c0_11, %c0_12, %c2] : memref<1x8x432xf32, #tpu.memory_space<vmem>>, vector<1x8x384xf32>
    %9 = vector.shape_cast %8 : vector<1x8x384xf32> to vector<8x384xf32>
    %c16 = arith.constant 16 : index
    %c0_13 = arith.constant 0 : index
    %10 = vector.load %arg5[%c16, %c0_13] : memref<72x384xf32, #tpu.memory_space<vmem>>, vector<8x384xf32>
    tpu.vector_store %arg5[%c16, %c0_13], %9 {strides = array<i32>} : memref<72x384xf32, #tpu.memory_space<vmem>>, vector<8x384xf32>,
    %c0_14 = arith.constant 0 : index
    %c0_15 = arith.constant 0 : index
    %c18 = arith.constant 18 : index
    %11 = vector.load %arg1[%c0_14, %c0_15, %c18] : memref<1x8x432xf32, #tpu.memory_space<vmem>>, vector<1x8x384xf32>
    %12 = vector.shape_cast %11 : vector<1x8x384xf32> to vector<8x384xf32>
    %c24 = arith.constant 24 : index
    %c0_16 = arith.constant 0 : index
    %13 = vector.load %arg5[%c24, %c0_16] : memref<72x384xf32, #tpu.memory_space<vmem>>, vector<8x384xf32>
    tpu.vector_store %arg5[%c24, %c0_16], %12 {strides = array<i32>} : memref<72x384xf32, #tpu.memory_space<vmem>>, vector<8x384xf32>,
    %c0_17 = arith.constant 0 : index
    %c0_18 = arith.constant 0 : index
    %c19 = arith.constant 19 : index
    %14 = vector.load %arg1[%c0_17, %c0_18, %c19] : memref<1x8x432xf32, #tpu.memory_space<vmem>>, vector<1x8x384xf32>
    %15 = vector.shape_cast %14 : vector<1x8x384xf32> to vector<8x384xf32>
    %c32 = arith.constant 32 : index
    %c0_19 = arith.constant 0 : index
    %16 = vector.load %arg5[%c32, %c0_19] : memref<72x384xf32, #tpu.memory_space<vmem>>, vector<8x384xf32>
    tpu.vector_store %arg5[%c32, %c0_19], %15 {strides = array<i32>} : memref<72x384xf32, #tpu.memory_space<vmem>>, vector<8x384xf32>,
    %c0_20 = arith.constant 0 : index
    %c0_21 = arith.constant 0 : index
    %c20 = arith.constant 20 : index
    %17 = vector.load %arg1[%c0_20, %c0_21, %c20] : memref<1x8x432xf32, #tpu.memory_space<vmem>>, vector<1x8x384xf32>
    %18 = vector.shape_cast %17 : vector<1x8x384xf32> to vector<8x384xf32>
    %c40 = arith.constant 40 : index
    %c0_22 = arith.constant 0 : index
    %19 = vector.load %arg5[%c40, %c0_22] : memref<72x384xf32, #tpu.memory_space<vmem>>, vector<8x384xf32>
    tpu.vector_store %arg5[%c40, %c0_22], %18 {strides = array<i32>} : memref<72x384xf32, #tpu.memory_space<vmem>>, vector<8x384xf32>,
    %c0_23 = arith.constant 0 : index
    %c0_24 = arith.constant 0 : index
    %c36 = arith.constant 36 : index
    %20 = vector.load %arg1[%c0_23, %c0_24, %c36] : memref<1x8x432xf32, #tpu.memory_space<vmem>>, vector<1x8x384xf32>
    %21 = vector.shape_cast %20 : vector<1x8x384xf32> to vector<8x384xf32>
    %c48 = arith.constant 48 : index
    %c0_25 = arith.constant 0 : index
    %22 = vector.load %arg5[%c48, %c0_25] : memref<72x384xf32, #tpu.memory_space<vmem>>, vector<8x384xf32>
    tpu.vector_store %arg5[%c48, %c0_25], %21 {strides = array<i32>} : memref<72x384xf32, #tpu.memory_space<vmem>>, vector<8x384xf32>,
    %c0_26 = arith.constant 0 : index
    %c0_27 = arith.constant 0 : index
    %c37 = arith.constant 37 : index
    %23 = vector.load %arg1[%c0_26, %c0_27, %c37] : memref<1x8x432xf32, #tpu.memory_space<vmem>>, vector<1x8x384xf32>
    %24 = vector.shape_cast %23 : vector<1x8x384xf32> to vector<8x384xf32>
    %c56 = arith.constant 56 : index
    %c0_28 = arith.constant 0 : index
    %25 = vector.load %arg5[%c56, %c0_28] : memref<72x384xf32, #tpu.memory_space<vmem>>, vector<8x384xf32>
    tpu.vector_store %arg5[%c56, %c0_28], %24 {strides = array<i32>} : memref<72x384xf32, #tpu.memory_space<vmem>>, vector<8x384xf32>,
    %c0_29 = arith.constant 0 : index
    %c0_30 = arith.constant 0 : index
    %c38 = arith.constant 38 : index
    %26 = vector.load %arg1[%c0_29, %c0_30, %c38] : memref<1x8x432xf32, #tpu.memory_space<vmem>>, vector<1x8x384xf32>
    %27 = vector.shape_cast %26 : vector<1x8x384xf32> to vector<8x384xf32>
    %c64 = arith.constant 64 : index
    %c0_31 = arith.constant 0 : index
    %28 = vector.load %arg5[%c64, %c0_31] : memref<72x384xf32, #tpu.memory_space<vmem>>, vector<8x384xf32>
    tpu.vector_store %arg5[%c64, %c0_31], %27 {strides = array<i32>} : memref<72x384xf32, #tpu.memory_space<vmem>>, vector<8x384xf32>,
    %c0_32 = arith.constant 0 : index
    %c0_33 = arith.constant 0 : index
    %29 = vector.load %arg5[%c0_32, %c0_33] : memref<72x384xf32, #tpu.memory_space<vmem>>, vector<72x384xf32>
    %cst = arith.constant dense<0.000000e+00> : vector<8x384xf32>
    %30 = tpu.matmul %0, %29, %cst {dimension_numbers = #tpu.dot_dimension_numbers<[1], [0], [0], [1], [0, 0, 1, 1], [], []>} : vector<8x72xf32>, vector<72x384xf32>, vector<8x384xf32> -> vector<8x384xf32>
    %31 = vector.broadcast %1 : vector<8x1xf32> to vector<8x384xf32>
    %32 = arith.addf %30, %31 : vector<8x384xf32>
    %cst_34 = arith.constant 0.000000e+00 : f32
    %33 = vector.broadcast %cst_34 : f32 to vector<8x384xf32>
    %34 = arith.maximumf %32, %33 : vector<8x384xf32>
    %c0_35 = arith.constant 0 : index
    %c0_36 = arith.constant 0 : index
    %c0_37 = arith.constant 0 : index
    %35 = vector.load %arg4[%c0_35, %c0_36, %c0_37] : memref<1x8x384xf32, #tpu.memory_space<vmem>>, vector<1x8x384xf32>
    %36 = vector.shape_cast %35 : vector<1x8x384xf32> to vector<8x384xf32>
    %37 = vector.shape_cast %34 : vector<8x384xf32> to vector<1x8x384xf32>
    tpu.vector_store %arg4[%c0_35, %c0_36, %c0_37], %37 {strides = array<i32>} : memref<1x8x384xf32, #tpu.memory_space<vmem>>, vector<1x8x384xf32>,
    return
  }
  func.func @transform_0(%arg0: i32) -> (i32, i32, i32) {
    %c0_i32 = arith.constant 0 : i32
    %c0_i32_0 = arith.constant 0 : i32
    %c0_i32_1 = arith.constant 0 : i32
    return %arg0, %c0_i32, %c0_i32_0 : i32, i32, i32
  }
  func.func @transform_1(%arg0: i32) -> (i32, i32) {
    %c0_i32 = arith.constant 0 : i32
    %c0_i32_0 = arith.constant 0 : i32
    %c0_i32_1 = arith.constant 0 : i32
    return %c0_i32, %c0_i32_0 : i32, i32
  }
  func.func @transform_2(%arg0: i32) -> (i32, i32) {
    %c0_i32 = arith.constant 0 : i32
    %c0_i32_0 = arith.constant 0 : i32
    %c0_i32_1 = arith.constant 0 : i32
    return %c0_i32, %c0_i32_0 : i32, i32
  }
  func.func @transform_3(%arg0: i32) -> (i32, i32, i32) {
    %c0_i32 = arith.constant 0 : i32
    %c0_i32_0 = arith.constant 0 : i32
    %c0_i32_1 = arith.constant 0 : i32
    return %arg0, %c0_i32, %c0_i32_0 : i32, i32, i32
  }
}

</mosaic_0001>

<bundles_post_ra>
// kernel: tpu_custom_call.1
= control target key start
LH: loop header
LB: loop body
LE: loop exit
PB: predicated region body
PF: predicated region fallthrough
CT: control target
= control target key end

     0   :  { %8 = vsyncpa [#allocation4], 0  ;;  %s1053_s0 = inlined_call_operand.hbm [shape: f32[2,8,432], index: 0, kind: input, shape index: {}]   ;;  %s1054_s1 = inlined_call_operand.vmem [shape: f32[8,72], index: 1, kind: input, shape index: {}]   ;;  %s1055_s2 = inlined_call_operand.vmem [shape: f32[8,1], index: 2, kind: input, shape index: {}]   ;;  %s1056_s3 = inlined_call_operand.hbm [shape: f32[2,8,384], index: 3, kind: output, shape index: {}]  }
   0x1   :  { %10 = vsyncpa [#allocation4 + $0x1], 0 }
   0x2   :  { %11 = vsyncpa [#allocation5], 0 }
   0x3   :  { %13 = vsyncpa [#allocation5 + $0x1], 0  ;;  %s875_s12 = smov 0   ;;  %s877_s13 = smov 0  }
   0x4   :  { %s879_s14 = smov 0   ;;  %s881_s15 = smov 0  }
   0x5 LB: > { %s896_s16 = sadd.s32 4294967295, %s844_s15   ;;  %s594_s17 = sadd.s32 4294967294, %s844_s15   ;;  %s844_s15 = sphi %s881_s15, %s1066_s15   ;;  %s840_s14 = sphi %s879_s14, %s1065_s14   ;;  %s836_s13 = sphi %s877_s13, %s1064_s13   ;;  %s832_s12 = sphi %s875_s12, %s1063_s12  }
   0x6   : > { %s900_s18 = sadd.s32 1, %s844_s15   ;;  %s26_s19 = sadd.s32 1, %s840_s14 }
   0x7   : > { %s23_s20 = ssub.s32 %s844_s15, %s900_s18  ;;  %p33_p0 = scmp.ne.s32.totalorder %s840_s14, %s836_s13 }
   0x8   : > { %p24_p1 = scmp.eq.s32.totalorder %s23_s20, 0  ;;  %p34_p2 = scmp.eq.s32.totalorder %s844_s15, 0 }
   0x9   : > { %p39_p3 = scmp.ne.s32.totalorder %s836_s13, %s832_s12  ;;  %p40_p4 = scmp.eq.s32.totalorder %s896_s16, 0 }
   0xa   : > { %s912_s21 = scalar_select %p24_p1, %s840_s14, %s26_s19  }
   0xb   : > { %p914_p5 = por %p34_p2, %p33_p0  ;;  %p918_p6 = por %p40_p4, %p39_p3 }
   0xc   : > { %p105_p7 = scmp.eq.s32.totalorder %s896_s16, 1  ;;  %p111_p8 = scmp.eq.s32.totalorder %s594_s17, 1 }
   0xd   : > { %p623_p10 = scmp.lt.s32.totalorder %s844_s15, 2  ;;  %s137_s26 = sand.u32 1, %s840_s14  }
   0xe   : > { %p925_p11 = por %p105_p7, %p33_p0  ;;  %p929_p12 = por %p111_p8, %p39_p3 }
   0xf   : > { %s608_s27 = sshll.u32 %s844_s15, 5  ;;  %s597_s28 = sshll.u32 %s137_s26, 5 }
  0x10   : > { %s146_s4 = scalar_lea.hbm %s1053_s0, %s608_s27  ;;  %s141_s6 = scalar_lea.vmem [#allocation3], %s597_s28 }
  0x11   : > { %s148_s5 = sshll.u32 %s146_s4, 4  ;;  %s150_s7 = sshll.u32 %s141_s6, 4  ;;  %s149_s5 = int_to_ptr.hbm [resolvable:$true] %s148_s5  ;;  %s151_s7 = int_to_ptr.vmem [resolvable:$true] %s150_s7 }
  0x12   : > { %p940_p13 = pnand %p623_p10, %p914_p5  ;;  %p600_p0 = scmp.ge.s32.totalorder %s844_s15, 1 }
  0x13   : > { %p155_p1 = scmp.lt.s32.totalorder %s844_s15, 3  ;;  %s138_s9 = scalar_lea.sflag [#allocation4], %s137_s26 }
  0x14   : > { %s748_s10 = sshra.s32 %s149_s5, 4  ;;  %p752_p3 = pneg %p940_p13  ;;  %s749_s10 = int_to_ptr.hbm [resolvable:$true] %s748_s10 }
  0x15   : > { %s750_s11 = scalar_lea.hbm %s749_s10, 32  ;;  %s755_s20 = scalar_lea.hbm %s1053_s0, 64 }
  0x16   : > { %p751_p2 = scmp.ne.s32.totalorder %s749_s10, %s750_s11  ;;  %p756_p5 = scmp.lt.s32.totalorder %s749_s10, %s1053_s0 }
  0x17   : > { %p757_p8 = scmp.lt.s32.totalorder %s755_s20, %s750_s11 }
  0x18   : > { %p753_p4 = pnand %p752_p3, %p751_p2 }
  0x19   : > { %p758_p10 = por %p757_p8, %p756_p5 }
  0x1a   : > { %p754_p7 = pneg %p753_p4 }
  0x1c   : > { %p759_p9 = pnand %p758_p10, %p754_p7 }
  0x1e   : > { %762 = shalt.err (!%p759_p9)
}
  0x1f   : > { %618 = dma.hbm_to_vmem [thread:$0]  (!%p940_p13), %s149_s5, 512, %s151_s7, %s138_s9  }
  0x20   : > { %p156_p2 = pnand %p600_p0, %p155_p1 }
  0x21   : > { %s961_s26 = sand.u32 (!%p156_p2), 1, %s836_s13  }
  0x22   : > { %159 = sbr.rel (%p156_p2) target bundleno = 338 (0x152), region = 32  ;;  %s601_s28 = sshll.u32 (!%p156_p2), %s961_s26, 5 }
  0x23   : > { %s162_s29 = scalar_lea.sflag (!%p156_p2), [#allocation4], %s961_s26  ;;  %s165_s30 = scalar_lea.vmem (!%p156_p2), [#allocation3], %s601_s28 }
  0x27   : > { %823 = dma.done.wait (%p918_p6), %s162_s29, 512  }
  0x28   : > { %825 = vsyncadd (%p918_p6), %s162_s29, 4294966784  ;;  %v969_v0 = vld [vmem:[%s165_s30 + $0x10] sm:$0xff]  ;;  %v382_v1 = vld [vmem:[%s165_s30 + $0x18] sm:$0xff]  ;;  %s846_s4 = smov 90   ;;  %s847_s5 = smov 92   ;;  %vm395_vm0 = vcmask 736256  }
  0x29   : > { %v971_v2 = vld [vmem:[%s165_s30] sm:$0xff]  ;;  %v666_v3 = vpack.i.bf16 %v382_v1, %v969_v0  ;;  %v974_v4 = vld [vmem:[%s165_s30 + $0x8] sm:$0xff]  ;;  %s848_s6 = smov 91   ;;  %s849_s23 = smov 108   ;;  %vm369_vm1 = vcmask 744448   ;;  %vm343_vm2 = vcmask 752640  }
  0x2a   : > { %v686_v5 = vpack.i.bf16 %v974_v4, %v971_v2  ;;  %s850_s7 = smov 109   ;;  %s851_s8 = smov 110   ;;  %vm317_vm3 = vcmask 883712   ;;  %vm291_vm4 = vcmask 891904   ;;  %v190_v33 = vld [vmem:[%s1055_s2] sm:$0xff]  ;;  %vm265_vm5 = vcmask 900096  }
  0x2b   : > { %667 = vrot.lane.b32.xlu0 %v666_v3, %s846_s4  ;;  %677 = vrot.lane.b32.xlu1 %v666_v3, %s847_s5  ;;  %s852_s9 = smov 126   ;;  %s853_s10 = smov 127   ;;  %v854_v37 = vmov 0   ;;  %vm239_vm6 = vcmask 1031168   ;;  %vm213_vm7 = vcmask 1039360   ;;  %v189_v60 = vld [vmem:[%s1054_s1] sm:$0xff] }
  0x2c   : > { %687 = vrot.lane.b32.xlu2 %v686_v5, %s846_s4  ;;  %746 = vset.pattern.permute.xlu1 %v854_v37  ;;  %vm437_vm8 = vcmask 588800   ;;  %s609_s22 = smul.u32 24, %s961_s26 }
  0x2d   : > { %747 = vset.pattern.permute.xlu0 %v854_v37  ;;  %s610_s27 = smul.u32 24, %s896_s16  ;;  %s508_s16 = scalar_lea.sflag [#allocation5], %s961_s26 }
  0x2e   : > { %s188_s28 = scalar_lea.vmem [#allocation6], %s609_s22 }
  0x2f   : > { %s519_s4 = scalar_lea.hbm %s1056_s3, %s610_s27 }
  0x33   : > { %672 = vrot.lane.b32.xlu0 %v666_v3, %s848_s6  ;;  %682 = vrot.lane.b32.xlu1 %v666_v3, %s849_s23 }
  0x34   : > { %692 = vrot.lane.b32.xlu2 %v666_v3, %s850_s7 }
  0x3b   : > { %697 = vrot.lane.b32.xlu0 %v686_v5, %s848_s6  ;;  %702 = vrot.lane.b32.xlu1 %v666_v3, %s851_s8  ;;  %s523_s6 = sshll.u32 %s519_s4, 4  ;;  %s524_s6 = int_to_ptr.hbm [resolvable:$true] %s523_s6 }
  0x3c   : > { %707 = vrot.lane.b32.xlu2 %v686_v5, %s847_s5  ;;  %s521_s5 = sshll.u32 %s188_s28, 4  ;;  %s522_s5 = int_to_ptr.vmem [resolvable:$true] %s521_s5 }
  0x43   : > { %717 = vrot.lane.b32.xlu1 %v686_v5, %s849_s23  ;;  %712 = vrot.lane.b32.xlu0 %v666_v3, %s852_s9  ;;  %s792_s23 = sshra.s32 %s524_s6, 4  ;;  %s793_s23 = int_to_ptr.hbm [resolvable:$true] %s792_s23 }
  0x44   : > { %722 = vrot.lane.b32.xlu2 %v666_v3, %s853_s10  ;;  %p799_p0 = scmp.lt.s32.totalorder %s793_s23, %s1056_s3 }
  0x4b   : > { %732 = vrot.lane.b32.xlu1 %v686_v5, %s851_s8  ;;  %727 = vrot.lane.b32.xlu0 %v686_v5, %s850_s7  ;;  %s794_s7 = scalar_lea.hbm %s793_s23, 24 }
  0x4c   : > { %737 = vrot.lane.b32.xlu2 %v686_v5, %s852_s9  ;;  %p795_p6 = scmp.ne.s32.totalorder %s793_s23, %s794_s7 }
  0x4e   : > { %p796_p9 = pnand %p795_p6, %p925_p11 }
  0x50   : > { %p797_p13 = pneg %p796_p9 }
  0x53   : > { %742 = vrot.lane.b32.xlu0 %v686_v5, %s853_s10  ;;  %434 = vperm.xlu1 %746, %v190_v33   ;;  %s798_s10 = scalar_lea.hbm %s1056_s3, 48 }
  0x54   : > { %p800_p1 = scmp.lt.s32.totalorder %s798_s10, %s794_s7 }
  0x56   : > { %p801_p3 = por %p800_p1, %p799_p0 }
  0x58   : > { %p802_p4 = pnand %p801_p3, %p797_p13 }
  0x86   : > { %v688_v6 = vpop.permute.xlu2 %687 }
  0x87   : > { %v690_v7 = vunpack.i.h.bf16 %v688_v6  ;;  %v689_v8 = vunpack.i.l.bf16 %v688_v6 }
  0x89   : > { %v396_v9 = vsel %vm395_vm0, %v689_v8, %v690_v7 }
  0x8a   : > { %448 = vmatpush.msra.mxu0 %v396_v9 }
  0x8e   : > { %v978_v14 = vpop.permute.xlu2 %692 }
  0x8f   : > { %v695_v25 = vunpack.i.h.bf16 %v978_v14  ;;  %v694_v26 = vunpack.i.l.bf16 %v978_v14 }
  0x91   : > { %v294_v32 = vsel %vm291_vm4, %v694_v26, %v695_v25 }
  0x96   : > { %v708_v28 = vpop.permute.xlu2 %707 }
  0x97   : > { %v709_v31 = vunpack.i.l.bf16 %v708_v28  ;;  %v710_v34 = vunpack.i.h.bf16 %v708_v28 }
  0x99   : > { %v344_v45 = vsel %vm343_vm2, %v709_v31, %v710_v34 }
  0x9d   : > { %v668_v10 = vpop.permute.xlu0 %667  ;;  %v678_v11 = vpop.permute.xlu1 %677 }
  0x9e   : > { %v670_v12 = vunpack.i.h.bf16 %v668_v10  ;;  %v669_v13 = vunpack.i.l.bf16 %v668_v10  ;;  %v680_v17 = vunpack.i.h.bf16 %v678_v11  ;;  %v679_v18 = vunpack.i.l.bf16 %v678_v11  ;;  %v723_v46 = vpop.permute.xlu2 %722 }
  0x9f   : > { %v725_v48 = vunpack.i.h.bf16 %v723_v46  ;;  %v724_v49 = vunpack.i.l.bf16 %v723_v46 }
  0xa0   : > { %v397_v15 = vsel %vm395_vm0, %v690_v7, %v669_v13  ;;  %v398_v16 = vsel %vm395_vm0, %v669_v13, %v670_v12  ;;  %v346_v29 = vsel %vm343_vm2, %v679_v18, %v680_v17  ;;  %v345_v47 = vsel %vm343_vm2, %v710_v34, %v679_v18 }
  0xa1   : > { %468 = vmatpush.msra.mxu1 %v397_v15  ;;  %488 = vmatpush.msra.mxu2 %v398_v16  ;;  %v216_v59 = vsel %vm213_vm7, %v724_v49, %v725_v48 }
  0xa5   : > { %v673_v19 = vpop.permute.xlu0 %672  ;;  %v683_v20 = vpop.permute.xlu1 %682 }
  0xa6   : > { %v675_v21 = vunpack.i.h.bf16 %v673_v19  ;;  %v674_v22 = vunpack.i.l.bf16 %v673_v19  ;;  %v685_v23 = vunpack.i.h.bf16 %v683_v20  ;;  %v684_v24 = vunpack.i.l.bf16 %v683_v20  ;;  %v738_v61 = vpop.permute.xlu2 %737 }
  0xa7   : > { %v739_v62 = vunpack.i.l.bf16 %v738_v61  ;;  %v740_v8 = vunpack.i.h.bf16 %v738_v61 }
  0xa8   : > { %v372_v27 = vsel %vm369_vm1, %v674_v22, %v675_v21  ;;  %v320_v30 = vsel %vm317_vm3, %v684_v24, %v685_v23 }
  0xa9   : > { %489 = vmatpush.msra.mxu2 %v372_v27 }
  0xab   : > { %490 = vmatpush.msra.mxu2 %v346_v29 }
  0xad   : > { %v698_v35 = vpop.permute.xlu0 %697  ;;  %491 = vmatpush.msra.mxu2 %v320_v30  ;;  %v703_v36 = vpop.permute.xlu1 %702 }
  0xae   : > { %v700_v38 = vunpack.i.h.bf16 %v698_v35  ;;  %v699_v39 = vunpack.i.l.bf16 %v698_v35  ;;  %v705_v40 = vunpack.i.h.bf16 %v703_v36  ;;  %v704_v41 = vunpack.i.l.bf16 %v703_v36 }
  0xaf   : > { %492 = vmatpush.msra.mxu2 %v294_v32 }
  0xb0   : > { %v370_v42 = vsel %vm369_vm1, %v699_v39, %v700_v38  ;;  %v371_v43 = vsel %vm369_vm1, %v700_v38, %v674_v22  ;;  %v268_v44 = vsel %vm265_vm5, %v704_v41, %v705_v40 }
  0xb1   : > { %449 = vmatpush.msra.mxu0 %v370_v42  ;;  %469 = vmatpush.msra.mxu1 %v371_v43 }
  0xb2   : > { %493 = vmatpush.msra.mxu2 %v268_v44 }
  0xb3   : > { %470 = vmatpush.msra.mxu1 %v345_v47  ;;  %450 = vmatpush.msra.mxu0 %v344_v45 }
  0xb5   : > { %v718_v50 = vpop.permute.xlu1 %717  ;;  %v713_v51 = vpop.permute.xlu0 %712 }
  0xb6   : > { %v720_v52 = vunpack.i.h.bf16 %v718_v50  ;;  %v719_v53 = vunpack.i.l.bf16 %v718_v50  ;;  %v715_v54 = vunpack.i.h.bf16 %v713_v51  ;;  %v714_v55 = vunpack.i.l.bf16 %v713_v51 }
  0xb8   : > { %v319_v56 = vsel %vm317_vm3, %v720_v52, %v684_v24  ;;  %v242_v57 = vsel %vm239_vm6, %v714_v55, %v715_v54  ;;  %v318_v58 = vsel %vm317_vm3, %v719_v53, %v720_v52  ;;  %v241_v13 = vsel %vm239_vm6, %v740_v8, %v714_v55 }
  0xb9   : > { %471 = vmatpush.msra.mxu1 %v319_v56  ;;  %494 = vmatpush.msra.mxu2 %v242_v57 }
  0xba   : > { %451 = vmatpush.msra.mxu0 %v318_v58 }
  0xbb   : > { %495 = vmatpush.msra.mxu2 %v216_v59 }
  0xbd   : > { %v733_v63 = vpop.permute.xlu1 %732  ;;  %v728_v1 = vpop.permute.xlu0 %727  ;;  %496 = vmatpush.msra.mxu2 %v969_v0  ;;  %v240_v0 = vsel %vm239_vm6, %v739_v62, %v740_v8 }
  0xbe   : > { %v735_v3 = vunpack.i.h.bf16 %v733_v63  ;;  %v734_v5 = vunpack.i.l.bf16 %v733_v63  ;;  %v730_v6 = vunpack.i.h.bf16 %v728_v1  ;;  %v729_v7 = vunpack.i.l.bf16 %v728_v1  ;;  %604 = vmatmul.msk.f32.vlgmr.msra.gmra.mxu2 %vm437_vm8, %v189_v60 }
  0xc0   : > { %v292_v9 = vsel %vm291_vm4, %v729_v7, %v730_v6  ;;  %v293_v10 = vsel %vm291_vm4, %v730_v6, %v694_v26  ;;  %v266_v11 = vsel %vm265_vm5, %v734_v5, %v735_v3  ;;  %v267_v12 = vsel %vm265_vm5, %v735_v3, %v704_v41 }
  0xc1   : > { %452 = vmatpush.msra.mxu0 %v292_v9  ;;  %472 = vmatpush.msra.mxu1 %v293_v10 }
  0xc3   : > { %473 = vmatpush.msra.mxu1 %v267_v12  ;;  %453 = vmatpush.msra.mxu0 %v266_v11 }
  0xc5   : > { %474 = vmatpush.msra.mxu1 %v241_v13  ;;  %v743_v15 = vpop.permute.xlu0 %742  ;;  %454 = vmatpush.msra.mxu0 %v240_v0  ;;  %v435_v19 = vpop.permute.xlu1 %434 }
  0xc6   : > { %v745_v14 = vunpack.i.h.bf16 %v743_v15  ;;  %v744_v16 = vunpack.i.l.bf16 %v743_v15 }
  0xc8   : > { %v214_v17 = vsel %vm213_vm7, %v744_v16, %v745_v14  ;;  %v215_v18 = vsel %vm213_vm7, %v745_v14, %v724_v49 }
  0xc9   : > { %455 = vmatpush.msra.mxu0 %v214_v17  ;;  %475 = vmatpush.msra.mxu1 %v215_v18 }
  0xcb   : > { %456 = vmatpush.msra.mxu0 %v971_v2  ;;  %476 = vmatpush.msra.mxu1 %v974_v4 }
  0xcc   : > { %602 = vmatmul.msk.f32.vlgmr.msra.gmra.mxu0 %vm437_vm8, %v189_v60  ;;  %603 = vmatmul.msk.f32.vlgmr.msra.gmra.mxu1 %vm437_vm8, %v189_v60 }
 0x141   : > { %v498_v20 = vpop.f32.mrf.mxu2 }
 0x142   : > { %v499_v21 = vadd.f32 %v498_v20, %v435_v19 }
 0x144   : > { %v503_v22 = vmax.f32 %v499_v21, 0.0 }
 0x146   : > { %506 = vst [vmem:[%s188_s28 + $0x10] sm:$0xff] %v503_v22 }
 0x149   : > { %v458_v2 = vpop.f32.mrf.mxu0  ;;  %v478_v23 = vpop.f32.mrf.mxu1 }
 0x14a   : > { %v459_v4 = vadd.f32 %v458_v2, %v435_v19  ;;  %v479_v24 = vadd.f32 %v478_v23, %v435_v19 }
 0x14c   : > { %v501_v25 = vmax.f32 %v459_v4, 0.0  ;;  %v502_v26 = vmax.f32 %v479_v24, 0.0 }
 0x14e   : > { %504 = vst [vmem:[%s188_s28] sm:$0xff] %v501_v25 }
 0x14f   : > { %505 = vst [vmem:[%s188_s28 + $0x8] sm:$0xff] %v502_v26 }
 0x150   : > { %805 = shalt.err (!%p802_p4)
}
 0x151   : > { %613 = dma.vmem_to_hbm [thread:$0]  (%p925_p11), %s522_s5, 384, %s524_s6, %s508_s16  }
 0x152 PF: > { %s535_s26 = sand.u32 1, %s832_s12   ;;  %p1062_p7 = scmp.ge.s32.totalorder %s844_s15, 2 }
 0x153   : > { %s536_s19 = scalar_lea.sflag [#allocation5], %s535_s26 }
 0x154   : > { %p620_p5 = pnand %p1062_p7, %p929_p12 }
 0x156   : > { %p621_p8 = pneg %p620_p5 }
 0x158   : > { %827 = dma.done.wait (%p621_p8), %s536_s19, 384  }
 0x159   : > { %829 = vsyncadd (%p621_p8), %s536_s19, 4294966912  ;;  %p16_p10 = scmp.ge.s32.totalorder %s900_s18, 4   ;;  %s1063_s12 = smov %s836_s13 }
 0x15a   : > { %s1064_s13 = smov %s840_s14  ;;  %s1065_s14 = smov %s912_s21 }
 0x15b   : > { %s1066_s15 = smov %s900_s18  ;;  %18 = sbr.rel (!%p16_p10) target bundleno = 5 (0x5), region = 77 }
 0x160   :  { %542 = vsyncpa [#allocation4], 1 }
 0x161   :  { %544 = vsyncpa [#allocation4 + $0x1], 1 }
 0x162   :  { %545 = vsyncpa [#allocation5], 1 }
 0x163   :  { %547 = vsyncpa [#allocation5 + $0x1], 1 }

</bundles_post_ra>
